<compile_context>
chip_gen: v6e
topology: v6e:2x2x1
jax: 0.10.0
libtpu: 0.0.40
codegen_flags: <defaults>
</compile_context>

<pallas_src>
import jax
import jax.numpy as jnp
from jax.experimental import pallas as pl
from jax.experimental.pallas import tpu as pltpu

PACK = 8  # batch rows packed into the lane/contraction dim per group row


def _round_up(v, m):
    return -(-v // m) * m


def mlp_kernel(xg_ref, w1_ref, b1_ref, w2_ref, b2_ref, w3_ref, b3_ref, o_ref):
    """Fused packed MLP on one batch tile.

    xg_ref : [TBG, PACK*D] f32  (8 consecutive batch rows packed per group row)
    w*_ref : block-diagonal bf16 weights (kron(I8, W)); b*_ref : tiled f32 biases
    o_ref  : [TBG, PACK]   f32  (col r of group row g = output of batch row 8g+r)
    """
    xg = xg_ref[...].astype(jnp.bfloat16)  # stream f32, cast in-kernel (VPU)
    # Layer 1: Linear(D, 64) + ReLU   (block-diag -> 8 samples per MXU push)
    h1 = jnp.dot(xg, w1_ref[...], preferred_element_type=jnp.float32)
    h1 = jnp.maximum(h1 + b1_ref[...], 0.0).astype(jnp.bfloat16)
    # Dropout(0.3): identity in eval mode.
    # Layer 2: Linear(64, 32) + ReLU
    h2 = jnp.dot(h1, w2_ref[...], preferred_element_type=jnp.float32)
    h2 = jnp.maximum(h2 + b2_ref[...], 0.0).astype(jnp.bfloat16)
    # Dropout(0.5): identity in eval mode.
    # Layer 3: Linear(32, 1)  (packed -> [TBG, 8] tile)
    y = jnp.dot(h2, w3_ref[...], preferred_element_type=jnp.float32) + b3_ref[...]
    o_ref[...] = y.astype(o_ref.dtype)


def pack_params(params):
    """One-time weight repack (hoisted out of the forward path).

    Block-diagonalizes each weight with kron(I_PACK, W) so one matmul handles
    PACK batch rows, and tiles biases to match the packed slot layout.
    """
    w1, b1, w2, b2, w3, b3 = params
    eye = jnp.eye(PACK, dtype=jnp.float32)
    w1bd = jnp.kron(eye, w1.astype(jnp.float32)).astype(jnp.bfloat16)  # [P*D,  P*64]
    w2bd = jnp.kron(eye, w2.astype(jnp.float32)).astype(jnp.bfloat16)  # [P*64, P*32]
    w3bd = jnp.kron(eye, w3.astype(jnp.float32)).astype(jnp.bfloat16)  # [P*32, P]
    b1t = jnp.tile(b1.reshape(1, -1).astype(jnp.float32), (1, PACK))   # [1, P*64]
    b2t = jnp.tile(b2.reshape(1, -1).astype(jnp.float32), (1, PACK))   # [1, P*32]
    b3t = jnp.tile(b3.reshape(1, -1).astype(jnp.float32), (1, PACK))   # [1, P]
    return (w1bd, b1t, w2bd, b2t, w3bd, b3t)


def loan_default_mlp(x, packed, *, tile_groups=2048):
    """Runs the fused MLP kernel. x: [B, D] float32. Returns [B, 1] float32."""
    w1bd, b1t, w2bd, b2t, w3bd, b3t = packed
    B, D = x.shape
    P = PACK
    if w1bd.shape[0] != P * D:
        raise ValueError("packed params do not match input_dim")
    tile_groups = max(8, int(tile_groups))

    # Pad rows only when needed so [B, D] -> [G, P*D] is a layout-free reshape
    # (common case B % 8 == 0: no extra HBM pass before the kernel).
    Bp = max(_round_up(B, P), P * 8)
    if Bp != B:
        x = jnp.zeros((Bp, D), x.dtype).at[:B].set(x)
    G = Bp // P
    xg = x.reshape(G, P * D)

    # Tiling: big tiles amortize per-step overhead; keep an even number of
    # >= 2 near-equal steps when there is enough work so v7x's two
    # TensorCores both get a share of the ("parallel",) grid axis.
    min_steps = 2 if G >= 128 else 1
    steps = max(min_steps, -(-G // tile_groups))
    if steps > 1 and steps % 2 == 1:
        steps += 1
    TBG = min(_round_up(-(-G // steps), 8), (G // 8) * 8)
    steps = -(-G // TBG)  # ragged last tile handled by Pallas OOB masking

    const = lambda a: pl.BlockSpec(a.shape, lambda i: (0,) * a.ndim)

    out = pl.pallas_call(
        mlp_kernel,
        out_shape=jax.ShapeDtypeStruct((G, P), jnp.float32),
        grid=(steps,),
        in_specs=[
            pl.BlockSpec((TBG, P * D), lambda i: (i, 0)),   # streamed x tiles
            const(w1bd), const(b1t),                        # VMEM-resident
            const(w2bd), const(b2t),
            const(w3bd), const(b3t),
        ],
        out_specs=pl.BlockSpec((TBG, P), lambda i: (i, 0)),
        compiler_params=pltpu.CompilerParams(
            dimension_semantics=("parallel",),              # megacore on v7x
            vmem_limit_bytes=32 * 1024 * 1024,
        ),
    )(xg, w1bd, b1t, w2bd, b2t, w3bd, b3t)

    # Unpack: group row g, col r  <->  batch row 8*g + r.
    return out.reshape(Bp, 1)[:B]


def init_params(key, input_dim):
    """Deterministic init mirroring nn.Linear (uniform +-1/sqrt(fan_in)).

    Weights are stored [in_features, out_features] (transpose of PyTorch),
    so the kernel computes y = x @ W + b == x @ W_pt.T + b_pt.
    """
    dims = [(input_dim, 64), (64, 32), (32, 1)]
    params = []
    for fan_in, fan_out in dims:
        key, kw, kb = jax.random.split(key, 3)
        bound = 1.0 / jnp.sqrt(float(fan_in))
        w = jax.random.uniform(kw, (fan_in, fan_out), jnp.float32, -bound, bound)
        b = jax.random.uniform(kb, (1, fan_out), jnp.float32, -bound, bound)
        params.extend([w, b])
    return tuple(params)


def reference_mlp(x, params):
    """Plain-JAX reference mirroring the kernel's bf16-operand / f32-accum math."""
    w1, b1, w2, b2, w3, b3 = params
    r = lambda a: a.astype(jnp.bfloat16).astype(jnp.float32)
    h1 = jnp.maximum(r(x) @ r(w1) + b1, 0.0)
    h2 = jnp.maximum(r(h1) @ r(w2) + b2, 0.0)
    return r(h2) @ r(w3) + b3


if __name__ == "__main__":
    key = jax.random.PRNGKey(0)
    key, kx = jax.random.split(key)

    input_dim = 16
    batch = 8
    x = jax.random.normal(kx, (batch, input_dim), dtype=jnp.float32)
    params = init_params(key, input_dim)
    packed = pack_params(params)          # one-time weight repack, hoisted

    fwd = jax.jit(loan_default_mlp)

    out = jax.block_until_ready(fwd(x, packed))
    ref = reference_mlp(x, params)
    assert out.shape == (batch, 1)
    assert jnp.allclose(out, ref, atol=1e-2, rtol=1e-2)

    # Larger batch: B % 8 == 0 exercises the copy-free reshape path, the
    # >= 2-step parallel grid, resident weights and the ragged last tile.
    key, kx2 = jax.random.split(key)
    batch2 = 5000
    x2 = jax.random.normal(kx2, (batch2, input_dim), dtype=jnp.float32)
    out2 = jax.block_until_ready(fwd(x2, packed))
    ref2 = reference_mlp(x2, params)
    assert out2.shape == (batch2, 1)
    assert jnp.allclose(out2, ref2, atol=1e-2, rtol=1e-2)

    print("KERNEL_OK")
</pallas_src>

<mosaic_0001>
module attributes {stable_mosaic.version = 11 : i64} {
  func.func @mlp_kernel(%arg0: i32, %arg1: memref<8x128xf32, #tpu.memory_space<vmem>>, %arg2: memref<128x512xbf16, #tpu.memory_space<vmem>>, %arg3: memref<1x512xf32, #tpu.memory_space<vmem>>, %arg4: memref<512x256xbf16, #tpu.memory_space<vmem>>, %arg5: memref<1x256xf32, #tpu.memory_space<vmem>>, %arg6: memref<256x8xbf16, #tpu.memory_space<vmem>>, %arg7: memref<1x8xf32, #tpu.memory_space<vmem>>, %arg8: memref<8x8xf32, #tpu.memory_space<vmem>>) attributes {dimension_semantics = [#tpu.dimension_semantics<parallel>], iteration_bounds = array<i64: 1>, scalar_prefetch = 0 : i64, scratch_operands = 0 : i64, tpu.core_type = #tpu.core_type<tc>, window_params = [{transform_indices = @transform_0, window_bounds = array<i64: 8, 128>}, {pipeline_mode = #tpu.pipeline_mode<synchronous>, transform_indices = @transform_1, window_bounds = array<i64: 128, 512>}, {pipeline_mode = #tpu.pipeline_mode<synchronous>, transform_indices = @transform_2, window_bounds = array<i64: 1, 512>}, {pipeline_mode = #tpu.pipeline_mode<synchronous>, transform_indices = @transform_3, window_bounds = array<i64: 512, 256>}, {pipeline_mode = #tpu.pipeline_mode<synchronous>, transform_indices = @transform_4, window_bounds = array<i64: 1, 256>}, {pipeline_mode = #tpu.pipeline_mode<synchronous>, transform_indices = @transform_5, window_bounds = array<i64: 256, 8>}, {pipeline_mode = #tpu.pipeline_mode<synchronous>, transform_indices = @transform_6, window_bounds = array<i64: 1, 8>}, {transform_indices = @transform_7, window_bounds = array<i64: 8, 8>}]} {
    %c0 = arith.constant 0 : index
    %c0_0 = arith.constant 0 : index
    %0 = vector.load %arg1[%c0, %c0_0] : memref<8x128xf32, #tpu.memory_space<vmem>>, vector<8x128xf32>
    %1 = arith.truncf %0 : vector<8x128xf32> to vector<8x128xbf16>
    %c0_1 = arith.constant 0 : index
    %c0_2 = arith.constant 0 : index
    %2 = vector.load %arg2[%c0_1, %c0_2] : memref<128x512xbf16, #tpu.memory_space<vmem>>, vector<128x512xbf16>
    %cst = arith.constant dense<0.000000e+00> : vector<8x512xf32>
    %3 = tpu.matmul %1, %2, %cst {dimension_numbers = #tpu.dot_dimension_numbers<[1], [0], [0], [1], [0, 0, 1, 1], [], []>} : vector<8x128xbf16>, vector<128x512xbf16>, vector<8x512xf32> -> vector<8x512xf32>
    %c0_3 = arith.constant 0 : index
    %c0_4 = arith.constant 0 : index
    %4 = vector.load %arg3[%c0_3, %c0_4] : memref<1x512xf32, #tpu.memory_space<vmem>>, vector<1x512xf32>
    %5 = vector.broadcast %4 : vector<1x512xf32> to vector<8x512xf32>
    %6 = arith.addf %3, %5 : vector<8x512xf32>
    %cst_5 = arith.constant 0.000000e+00 : f32
    %7 = vector.broadcast %cst_5 : f32 to vector<8x512xf32>
    %8 = arith.maximumf %6, %7 : vector<8x512xf32>
    %9 = arith.truncf %8 : vector<8x512xf32> to vector<8x512xbf16>
    %c0_6 = arith.constant 0 : index
    %c0_7 = arith.constant 0 : index
    %10 = vector.load %arg4[%c0_6, %c0_7] : memref<512x256xbf16, #tpu.memory_space<vmem>>, vector<512x256xbf16>
    %cst_8 = arith.constant dense<0.000000e+00> : vector<8x256xf32>
    %11 = tpu.matmul %9, %10, %cst_8 {dimension_numbers = #tpu.dot_dimension_numbers<[1], [0], [0], [1], [0, 0, 1, 1], [], []>} : vector<8x512xbf16>, vector<512x256xbf16>, vector<8x256xf32> -> vector<8x256xf32>
    %c0_9 = arith.constant 0 : index
    %c0_10 = arith.constant 0 : index
    %12 = vector.load %arg5[%c0_9, %c0_10] : memref<1x256xf32, #tpu.memory_space<vmem>>, vector<1x256xf32>
    %13 = vector.broadcast %12 : vector<1x256xf32> to vector<8x256xf32>
    %14 = arith.addf %11, %13 : vector<8x256xf32>
    %cst_11 = arith.constant 0.000000e+00 : f32
    %15 = vector.broadcast %cst_11 : f32 to vector<8x256xf32>
    %16 = arith.maximumf %14, %15 : vector<8x256xf32>
    %17 = arith.truncf %16 : vector<8x256xf32> to vector<8x256xbf16>
    %c0_12 = arith.constant 0 : index
    %c0_13 = arith.constant 0 : index
    %18 = vector.load %arg6[%c0_12, %c0_13] : memref<256x8xbf16, #tpu.memory_space<vmem>>, vector<256x8xbf16>
    %cst_14 = arith.constant dense<0.000000e+00> : vector<8x8xf32>
    %19 = tpu.matmul %17, %18, %cst_14 {dimension_numbers = #tpu.dot_dimension_numbers<[1], [0], [0], [1], [0, 0, 1, 1], [], []>} : vector<8x256xbf16>, vector<256x8xbf16>, vector<8x8xf32> -> vector<8x8xf32>
    %c0_15 = arith.constant 0 : index
    %c0_16 = arith.constant 0 : index
    %20 = vector.load %arg7[%c0_15, %c0_16] : memref<1x8xf32, #tpu.memory_space<vmem>>, vector<1x8xf32>
    %21 = vector.broadcast %20 : vector<1x8xf32> to vector<8x8xf32>
    %22 = arith.addf %19, %21 : vector<8x8xf32>
    %c0_17 = arith.constant 0 : index
    %c0_18 = arith.constant 0 : index
    %23 = vector.load %arg8[%c0_17, %c0_18] : memref<8x8xf32, #tpu.memory_space<vmem>>, vector<8x8xf32>
    tpu.vector_store %arg8[%c0_17, %c0_18], %22 {strides = array<i32>} : memref<8x8xf32, #tpu.memory_space<vmem>>, vector<8x8xf32>,
    return
  }
  func.func @transform_0(%arg0: i32) -> (i32, i32) {
    %c0_i32 = arith.constant 0 : i32
    %c0_i32_0 = arith.constant 0 : i32
    return %arg0, %c0_i32 : i32, i32
  }
  func.func @transform_1(%arg0: i32) -> (i32, i32) {
    %c0_i32 = arith.constant 0 : i32
    %c0_i32_0 = arith.constant 0 : i32
    %c0_i32_1 = arith.constant 0 : i32
    return %c0_i32, %c0_i32_0 : i32, i32
  }
  func.func @transform_2(%arg0: i32) -> (i32, i32) {
    %c0_i32 = arith.constant 0 : i32
    %c0_i32_0 = arith.constant 0 : i32
    %c0_i32_1 = arith.constant 0 : i32
    return %c0_i32, %c0_i32_0 : i32, i32
  }
  func.func @transform_3(%arg0: i32) -> (i32, i32) {
    %c0_i32 = arith.constant 0 : i32
    %c0_i32_0 = arith.constant 0 : i32
    %c0_i32_1 = arith.constant 0 : i32
    return %c0_i32, %c0_i32_0 : i32, i32
  }
  func.func @transform_4(%arg0: i32) -> (i32, i32) {
    %c0_i32 = arith.constant 0 : i32
    %c0_i32_0 = arith.constant 0 : i32
    %c0_i32_1 = arith.constant 0 : i32
    return %c0_i32, %c0_i32_0 : i32, i32
  }
  func.func @transform_5(%arg0: i32) -> (i32, i32) {
    %c0_i32 = arith.constant 0 : i32
    %c0_i32_0 = arith.constant 0 : i32
    %c0_i32_1 = arith.constant 0 : i32
    return %c0_i32, %c0_i32_0 : i32, i32
  }
  func.func @transform_6(%arg0: i32) -> (i32, i32) {
    %c0_i32 = arith.constant 0 : i32
    %c0_i32_0 = arith.constant 0 : i32
    %c0_i32_1 = arith.constant 0 : i32
    return %c0_i32, %c0_i32_0 : i32, i32
  }
  func.func @transform_7(%arg0: i32) -> (i32, i32) {
    %c0_i32 = arith.constant 0 : i32
    %c0_i32_0 = arith.constant 0 : i32
    return %arg0, %c0_i32 : i32, i32
  }
}

</mosaic_0001>

<bundles_post_ra>
// kernel: loan_default_mlp.1
= control target key start
LH: loop header
LB: loop body
LE: loop exit
PB: predicated region body
PF: predicated region fallthrough
CT: control target
= control target key end

     0   :  { %12 = vsyncpa [#allocation3], 0  ;;  %s1332_s24 = smov [#allocation2]   ;;  %s1548_s0 = inlined_call_operand.vmem [shape: f32[8,128], index: 0, kind: input, shape index: {}]   ;;  %s1549_s1 = inlined_call_operand.vmem [shape: bf16[128,512], index: 1, kind: input, shape index: {}]   ;;  %s1550_s2 = inlined_call_operand.vmem [shape: f32[1,512], index: 2, kind: input, shape index: {}]   ;;  %s1551_s3 = inlined_call_operand.hbm [shape: bf16[512,256], index: 3, kind: input, shape index: {}]   ;;  %s1552_s4 = inlined_call_operand.vmem [shape: f32[1,256], index: 4, kind: input, shape index: {}]   ;;  %s1553_s5 = inlined_call_operand.vmem [shape: bf16[256,8], index: 5, kind: input, shape index: {}]   ;;  %s1554_s6 = inlined_call_operand.vmem [shape: f32[1,8], index: 6, kind: input, shape index: {}]   ;;  %s1555_s7 = inlined_call_operand.vmem [shape: f32[8,8], index: 7, kind: output, shape index: {}]  }
   0x1   :  { %s24_s25 = sshll.u32 %s1332_s24, 4  ;;  %s25_s25 = int_to_ptr.vmem [resolvable:$true] %s24_s25 }
   0x2   :  { %s1318_s26 = scalar_lea.vmem %s25_s25, 8192  ;;  %p1323_p1 = scmp.lt.s32.totalorder %s25_s25, %s25_s25 }
   0x3   :  { %p1319_p0 = scmp.ne.s32.totalorder %s25_s25, %s1318_s26  ;;  %p1324_p2 = scmp.lt.s32.totalorder %s1318_s26, %s1318_s26 }
   0x5   :  { %p1325_p3 = por %p1324_p2, %p1323_p1 }
   0x7   :  { %p1326_p4 = pnand %p1325_p3, %p1319_p0 }
   0x9   :  { %1329 = shalt.err (!%p1326_p4)
}
   0xa   :  { %s1333_s27 = smov 128   ;;  %s1334_s28 = smov 8  }
   0xb   :  { %30 = dma.hbm_to_vmem [thread:$0]  %s1551_s3, 8192, %s25_s25, [#allocation3], %s1333_s27, %s1333_s27, %s1334_s28  }
   0xc   :  { %1330 = dma.done.wait [#allocation3], 8192  }
   0xd   :  { %1331 = vsyncadd [#allocation3], 4294959104  ;;  %v1335_v0 = vmov 0   ;;  %v1150_v1 = vld [vmem:[%s1549_s1 + $0xe4] ss:$16 sps:$4 sm:$0xff]   ;;  %vm1004_vm0 = vcmask 64512  }
   0xe   :  { %289 = vmatprep.mubr.bf16.mxu0 %v1335_v0  ;;  %330 = vmatprep.mubr.bf16.mxu1 %v1335_v0  ;;  %v1152_v2 = vld [vmem:[%s1549_s1 + $0xec] ss:$16 sps:$4 sm:$0xff]   ;;  %v1154_v3 = vld [vmem:[%s1549_s1 + $0xe0] ss:$16 sps:$4 sm:$0xff]   ;;  %v1155_v4 = vld [vmem:[%s1549_s1 + $0xe8] ss:$16 sps:$4 sm:$0xff]  }
   0xf   :  { %257 = vmatprep.subr.bf16.mxu0 %v1150_v1  ;;  %298 = vmatprep.subr.bf16.mxu1 %v1152_v2  ;;  %v1156_v5 = vld [vmem:[%s1549_s1 + $0xc4] ss:$16 sps:$4 sm:$0xff]   ;;  %v1158_v6 = vld [vmem:[%s1549_s1 + $0xcc] ss:$16 sps:$4 sm:$0xff]   ;;  %v1160_v7 = vld [vmem:[%s1549_s1 + $0xc0] ss:$16 sps:$4 sm:$0xff]  }
  0x10   :  { %258 = vmatpush1.bf16.msra.mxu0 %v1154_v3  ;;  %299 = vmatpush1.bf16.msra.mxu1 %v1155_v4  ;;  %v1161_v8 = vld [vmem:[%s1549_s1 + $0xc8] ss:$16 sps:$4 sm:$0xff]   ;;  %v1162_v9 = vld [vmem:[%s1549_s1 + $0xa4] ss:$16 sps:$4 sm:$0xff]   ;;  %v1164_v10 = vld [vmem:[%s1549_s1 + $0xac] ss:$16 sps:$4 sm:$0xff]  }
  0x11   :  { %259 = vmatprep.subr.bf16.mxu0 %v1156_v5  ;;  %300 = vmatprep.subr.bf16.mxu1 %v1158_v6  ;;  %v1166_v11 = vld [vmem:[%s1549_s1 + $0xa0] ss:$16 sps:$4 sm:$0xff]   ;;  %v1167_v12 = vld [vmem:[%s1549_s1 + $0xa8] ss:$16 sps:$4 sm:$0xff]   ;;  %v1168_v13 = vld [vmem:[%s1549_s1 + $0x84] ss:$16 sps:$4 sm:$0xff]  }
  0x12   :  { %v1170_v14 = vld [vmem:[%s1549_s1 + $0x8c] ss:$16 sps:$4 sm:$0xff]   ;;  %v1172_v15 = vld [vmem:[%s1549_s1 + $0x80] ss:$16 sps:$4 sm:$0xff]   ;;  %v1173_v16 = vld [vmem:[%s1549_s1 + $0x88] ss:$16 sps:$4 sm:$0xff]  }
  0x13   :  { %v1174_v17 = vld [vmem:[%s1549_s1 + $0x64] ss:$16 sps:$4 sm:$0xff]   ;;  %v1176_v18 = vld [vmem:[%s1549_s1 + $0x6c] ss:$16 sps:$4 sm:$0xff]   ;;  %v1178_v19 = vld [vmem:[%s1549_s1 + $0x60] ss:$16 sps:$4 sm:$0xff]  }
  0x14   :  { %260 = vmatpush1.bf16.msra.mxu0 %v1160_v7  ;;  %301 = vmatpush1.bf16.msra.mxu1 %v1161_v8  ;;  %v1179_v20 = vld [vmem:[%s1549_s1 + $0x68] ss:$16 sps:$4 sm:$0xff]   ;;  %v1180_v21 = vld [vmem:[%s1549_s1 + $0x44] ss:$16 sps:$4 sm:$0xff]   ;;  %v1182_v22 = vld [vmem:[%s1549_s1 + $0x4c] ss:$16 sps:$4 sm:$0xff]  }
  0x15   :  { %261 = vmatprep.subr.bf16.mxu0 %v1162_v9  ;;  %302 = vmatprep.subr.bf16.mxu1 %v1164_v10  ;;  %v1184_v23 = vld [vmem:[%s1549_s1 + $0x40] ss:$16 sps:$4 sm:$0xff]   ;;  %v1185_v24 = vld [vmem:[%s1549_s1 + $0x48] ss:$16 sps:$4 sm:$0xff]   ;;  %v1186_v25 = vld [vmem:[%s1549_s1 + $0x24] ss:$16 sps:$4 sm:$0xff]  }
  0x16   :  { %v1188_v26 = vld [vmem:[%s1549_s1 + $0x2c] ss:$16 sps:$4 sm:$0xff]   ;;  %v1190_v27 = vld [vmem:[%s1549_s1 + $0x20] ss:$16 sps:$4 sm:$0xff]   ;;  %v1191_v28 = vld [vmem:[%s1549_s1 + $0x28] ss:$16 sps:$4 sm:$0xff]  }
  0x17   :  { %v1192_v29 = vld [vmem:[%s1549_s1 + $0x4] ss:$16 sps:$4 sm:$0xff]   ;;  %v1194_v30 = vld [vmem:[%s1549_s1 + $0xc] ss:$16 sps:$4 sm:$0xff]   ;;  %v1196_v31 = vld [vmem:[%s1549_s1] ss:$16 sps:$4 sm:$0xff]  }
  0x18   :  { %262 = vmatpush1.bf16.msra.mxu0 %v1166_v11  ;;  %303 = vmatpush1.bf16.msra.mxu1 %v1167_v12  ;;  %v1197_v32 = vld [vmem:[%s1549_s1 + $0x8] ss:$16 sps:$4 sm:$0xff]   ;;  %v41_v33 = vld [vmem:[%s1548_s0] sm:$0xff]  ;;  %v1200_v34 = vld [vmem:[#allocation2 + $0x74] ss:$8 sps:$4 sm:$0xff]  }
  0x19   :  { %263 = vmatprep.subr.bf16.mxu0 %v1168_v13  ;;  %304 = vmatprep.subr.bf16.mxu1 %v1170_v14  ;;  %v1203_v35 = vld [vmem:[#allocation2 + $0x174] ss:$8 sps:$4 sm:$0xff]   ;;  %v42_v36 = vpack.c.bf16 %v41_v33, %v41_v33  ;;  %v1198_v37 = vld [vmem:[#allocation2 + $0x70] ss:$8 sps:$4 sm:$0xff]   ;;  %v1206_v39 = vld [vmem:[#allocation2 + $0x64] ss:$8 sps:$4 sm:$0xff]  }
  0x1a   :  { %v1201_v38 = vld [vmem:[#allocation2 + $0x170] ss:$8 sps:$4 sm:$0xff]   ;;  %v1209_v40 = vld [vmem:[#allocation2 + $0x164] ss:$8 sps:$4 sm:$0xff]   ;;  %v1204_v41 = vld [vmem:[#allocation2 + $0x60] ss:$8 sps:$4 sm:$0xff]  }
  0x1b   :  { %v1207_v42 = vld [vmem:[#allocation2 + $0x160] ss:$8 sps:$4 sm:$0xff]   ;;  %v1212_v43 = vld [vmem:[#allocation2 + $0x54] ss:$8 sps:$4 sm:$0xff]   ;;  %v1210_v45 = vld [vmem:[#allocation2 + $0x50] ss:$8 sps:$4 sm:$0xff]  }
  0x1c   :  { %264 = vmatpush1.bf16.msra.mxu0 %v1172_v15  ;;  %305 = vmatpush1.bf16.msra.mxu1 %v1173_v16  ;;  %v1215_v44 = vld [vmem:[#allocation2 + $0x154] ss:$8 sps:$4 sm:$0xff]   ;;  %v1213_v46 = vld [vmem:[#allocation2 + $0x150] ss:$8 sps:$4 sm:$0xff]   ;;  %v1218_v47 = vld [vmem:[#allocation2 + $0x44] ss:$8 sps:$4 sm:$0xff]  }
  0x1d   :  { %265 = vmatprep.subr.bf16.mxu0 %v1174_v17  ;;  %306 = vmatprep.subr.bf16.mxu1 %v1176_v18  ;;  %v1221_v48 = vld [vmem:[#allocation2 + $0x144] ss:$8 sps:$4 sm:$0xff]   ;;  %v1216_v49 = vld [vmem:[#allocation2 + $0x40] ss:$8 sps:$4 sm:$0xff]   ;;  %v1224_v51 = vld [vmem:[#allocation2 + $0x34] ss:$8 sps:$4 sm:$0xff]  }
  0x1e   :  { %v1219_v50 = vld [vmem:[#allocation2 + $0x140] ss:$8 sps:$4 sm:$0xff]   ;;  %v1227_v52 = vld [vmem:[#allocation2 + $0x134] ss:$8 sps:$4 sm:$0xff]   ;;  %v1222_v53 = vld [vmem:[#allocation2 + $0x30] ss:$8 sps:$4 sm:$0xff]  }
  0x1f   :  { %v1225_v54 = vld [vmem:[#allocation2 + $0x130] ss:$8 sps:$4 sm:$0xff]   ;;  %v1230_v55 = vld [vmem:[#allocation2 + $0x24] ss:$8 sps:$4 sm:$0xff]   ;;  %v1228_v57 = vld [vmem:[#allocation2 + $0x20] ss:$8 sps:$4 sm:$0xff]  }
  0x20   :  { %266 = vmatpush1.bf16.msra.mxu0 %v1178_v19  ;;  %307 = vmatpush1.bf16.msra.mxu1 %v1179_v20  ;;  %v1233_v56 = vld [vmem:[#allocation2 + $0x124] ss:$8 sps:$4 sm:$0xff]   ;;  %v1231_v58 = vld [vmem:[#allocation2 + $0x120] ss:$8 sps:$4 sm:$0xff]   ;;  %v1236_v59 = vld [vmem:[#allocation2 + $0x14] ss:$8 sps:$4 sm:$0xff]  }
  0x21   :  { %267 = vmatprep.subr.bf16.mxu0 %v1180_v21  ;;  %308 = vmatprep.subr.bf16.mxu1 %v1182_v22  ;;  %v1239_v60 = vld [vmem:[#allocation2 + $0x114] ss:$8 sps:$4 sm:$0xff]   ;;  %v1234_v61 = vld [vmem:[#allocation2 + $0x10] ss:$8 sps:$4 sm:$0xff]   ;;  %v1242_v63 = vld [vmem:[#allocation2 + $0x4] ss:$8 sps:$4 sm:$0xff]  }
  0x22   :  { %v1237_v62 = vld [vmem:[#allocation2 + $0x110] ss:$8 sps:$4 sm:$0xff]   ;;  %v1245_v0 = vld [vmem:[#allocation2 + $0x104] ss:$8 sps:$4 sm:$0xff]   ;;  %v1240_v1 = vld [vmem:[#allocation2] ss:$8 sps:$4 sm:$0xff]  }
  0x23   :  { %v1243_v2 = vld [vmem:[#allocation2 + $0x100] ss:$8 sps:$4 sm:$0xff]   ;;  %v1248_v3 = vld [vmem:[#allocation2 + $0xf4] ss:$8 sps:$4 sm:$0xff]   ;;  %v1246_v5 = vld [vmem:[#allocation2 + $0xf0] ss:$8 sps:$4 sm:$0xff]  }
  0x24   :  { %268 = vmatpush1.bf16.msra.mxu0 %v1184_v23  ;;  %309 = vmatpush1.bf16.msra.mxu1 %v1185_v24  ;;  %v1251_v4 = vld [vmem:[#allocation2 + $0x1f4] ss:$8 sps:$4 sm:$0xff]   ;;  %v1249_v6 = vld [vmem:[#allocation2 + $0x1f0] ss:$8 sps:$4 sm:$0xff]   ;;  %v1254_v7 = vld [vmem:[#allocation2 + $0xe4] ss:$8 sps:$4 sm:$0xff]  }
  0x25   :  { %269 = vmatprep.subr.bf16.mxu0 %v1186_v25  ;;  %310 = vmatprep.subr.bf16.mxu1 %v1188_v26  ;;  %v1257_v8 = vld [vmem:[#allocation2 + $0x1e4] ss:$8 sps:$4 sm:$0xff]   ;;  %v1252_v9 = vld [vmem:[#allocation2 + $0xe0] ss:$8 sps:$4 sm:$0xff]   ;;  %v1260_v11 = vld [vmem:[#allocation2 + $0xd4] ss:$8 sps:$4 sm:$0xff]  }
  0x26   :  { %v1255_v10 = vld [vmem:[#allocation2 + $0x1e0] ss:$8 sps:$4 sm:$0xff]   ;;  %v1263_v12 = vld [vmem:[#allocation2 + $0x1d4] ss:$8 sps:$4 sm:$0xff]   ;;  %v1258_v13 = vld [vmem:[#allocation2 + $0xd0] ss:$8 sps:$4 sm:$0xff]  }
  0x27   :  { %v1261_v14 = vld [vmem:[#allocation2 + $0x1d0] ss:$8 sps:$4 sm:$0xff]   ;;  %v1266_v15 = vld [vmem:[#allocation2 + $0xc4] ss:$8 sps:$4 sm:$0xff]   ;;  %v1264_v17 = vld [vmem:[#allocation2 + $0xc0] ss:$8 sps:$4 sm:$0xff]  }
  0x28   :  { %270 = vmatpush1.bf16.msra.mxu0 %v1190_v27  ;;  %311 = vmatpush1.bf16.msra.mxu1 %v1191_v28  ;;  %v1269_v16 = vld [vmem:[#allocation2 + $0x1c4] ss:$8 sps:$4 sm:$0xff]   ;;  %v1267_v18 = vld [vmem:[#allocation2 + $0x1c0] ss:$8 sps:$4 sm:$0xff]   ;;  %v1272_v19 = vld [vmem:[#allocation2 + $0xb4] ss:$8 sps:$4 sm:$0xff]  }
  0x29   :  { %271 = vmatprep.subr.bf16.mxu0 %v1192_v29  ;;  %312 = vmatprep.subr.bf16.mxu1 %v1194_v30  ;;  %v1275_v20 = vld [vmem:[#allocation2 + $0x1b4] ss:$8 sps:$4 sm:$0xff]   ;;  %v1270_v21 = vld [vmem:[#allocation2 + $0xb0] ss:$8 sps:$4 sm:$0xff]   ;;  %v1278_v23 = vld [vmem:[#allocation2 + $0xa4] ss:$8 sps:$4 sm:$0xff]  }
  0x2a   :  { %v1273_v22 = vld [vmem:[#allocation2 + $0x1b0] ss:$8 sps:$4 sm:$0xff]   ;;  %v1281_v24 = vld [vmem:[#allocation2 + $0x1a4] ss:$8 sps:$4 sm:$0xff]   ;;  %v1276_v25 = vld [vmem:[#allocation2 + $0xa0] ss:$8 sps:$4 sm:$0xff]  }
  0x2b   :  { %v1279_v26 = vld [vmem:[#allocation2 + $0x1a0] ss:$8 sps:$4 sm:$0xff]   ;;  %v1284_v27 = vld [vmem:[#allocation2 + $0x94] ss:$8 sps:$4 sm:$0xff]   ;;  %v1282_v29 = vld [vmem:[#allocation2 + $0x90] ss:$8 sps:$4 sm:$0xff]  }
  0x2c   :  { %272 = vmatpush1.bf16.msra.mxu0 %v1196_v31  ;;  %313 = vmatpush1.bf16.msra.mxu1 %v1197_v32  ;;  %v1287_v28 = vld [vmem:[#allocation2 + $0x194] ss:$8 sps:$4 sm:$0xff]   ;;  %v1285_v30 = vld [vmem:[#allocation2 + $0x190] ss:$8 sps:$4 sm:$0xff]   ;;  %v1290_v31 = vld [vmem:[#allocation2 + $0x84] ss:$8 sps:$4 sm:$0xff]  }
  0x2d   :  { %743 = vmatprep.subr.bf16.mxu0 %v1200_v34  ;;  %784 = vmatprep.subr.bf16.mxu1 %v1203_v35  ;;  %v1293_v32 = vld [vmem:[#allocation2 + $0x184] ss:$8 sps:$4 sm:$0xff]   ;;  %v1288_v33 = vld [vmem:[#allocation2 + $0x80] ss:$8 sps:$4 sm:$0xff]   ;;  %v1294_v35 = vld [vmem:[%s1553_s5 + $0x78] sm:$0xff]  }
  0x2e   :  { %v1291_v34 = vld [vmem:[#allocation2 + $0x180] ss:$8 sps:$4 sm:$0xff]  }
  0x2f   :  { %290 = vmatmul.mubr.bf16.vlgmr.msra.gmra.mxu0 %v42_v36  ;;  %331 = vmatmul.mubr.bf16.vlgmr.msra.gmra.mxu1 %v42_v36  ;;  %v77_v36 = vlaneseq }
  0x30   :  { %744 = vmatpush1.bf16.msra.mxu0 %v1198_v37  ;;  %785 = vmatpush1.bf16.msra.mxu1 %v1201_v38 }
  0x31   :  { %745 = vmatprep.subr.bf16.mxu0 %v1206_v39  ;;  %786 = vmatprep.subr.bf16.mxu1 %v1209_v40  ;;  %v1481_v37 = vshrl.u32 %v77_v36, 7  ;;  %v75_v40 = vld [vmem:[%s1550_s2] sm:$0xf] }
  0x33   :  { %v79_v38 = vsub.s32 0, %v1481_v37  ;;  %v87_v39 = vsub.s32 2, %v1481_v37 }
  0x34   :  { %746 = vmatpush1.bf16.msra.mxu0 %v1204_v41  ;;  %787 = vmatpush1.bf16.msra.mxu1 %v1207_v42  ;;  %v83_v41 = vsub.s32 1, %v1481_v37  ;;  %v91_v42 = vsub.s32 3, %v1481_v37 }
  0x35   :  { %747 = vmatprep.subr.bf16.mxu0 %v1212_v43  ;;  %788 = vmatprep.subr.bf16.mxu1 %v1215_v44  ;;  %v80_v43 = vrot.slane %v75_v40, %v79_v38  ;;  %v88_v44 = vrot.slane %v75_v40, %v87_v39 }
  0x38   :  { %748 = vmatpush1.bf16.msra.mxu0 %v1210_v45  ;;  %789 = vmatpush1.bf16.msra.mxu1 %v1213_v46  ;;  %v84_v45 = vrot.slane %v75_v40, %v83_v41  ;;  %v92_v46 = vrot.slane %v75_v40, %v91_v42 }
  0x39   :  { %749 = vmatprep.subr.bf16.mxu0 %v1218_v47  ;;  %790 = vmatprep.subr.bf16.mxu1 %v1221_v48 }
  0x3c   :  { %750 = vmatpush1.bf16.msra.mxu0 %v1216_v49  ;;  %791 = vmatpush1.bf16.msra.mxu1 %v1219_v50 }
  0x3d   :  { %751 = vmatprep.subr.bf16.mxu0 %v1224_v51  ;;  %792 = vmatprep.subr.bf16.mxu1 %v1227_v52 }
  0x40   :  { %752 = vmatpush1.bf16.msra.mxu0 %v1222_v53  ;;  %793 = vmatpush1.bf16.msra.mxu1 %v1225_v54 }
  0x41   :  { %753 = vmatprep.subr.bf16.mxu0 %v1230_v55  ;;  %794 = vmatprep.subr.bf16.mxu1 %v1233_v56 }
  0x44   :  { %754 = vmatpush1.bf16.msra.mxu0 %v1228_v57  ;;  %795 = vmatpush1.bf16.msra.mxu1 %v1231_v58 }
  0x45   :  { %755 = vmatprep.subr.bf16.mxu0 %v1236_v59  ;;  %796 = vmatprep.subr.bf16.mxu1 %v1239_v60 }
  0x48   :  { %756 = vmatpush1.bf16.msra.mxu0 %v1234_v61  ;;  %797 = vmatpush1.bf16.msra.mxu1 %v1237_v62 }
  0x49   :  { %757 = vmatprep.subr.bf16.mxu0 %v1242_v63  ;;  %798 = vmatprep.subr.bf16.mxu1 %v1245_v0 }
  0x4c   :  { %758 = vmatpush1.bf16.msra.mxu0 %v1240_v1  ;;  %799 = vmatpush1.bf16.msra.mxu1 %v1243_v2  ;;  %v1295_v2 = vld [vmem:[%s1553_s5 + $0x38] sm:$0xff]  }
  0x4d   :  { %759 = vmatprep.subr.bf16.mxu0 %v1248_v3  ;;  %800 = vmatprep.subr.bf16.mxu1 %v1251_v4  ;;  %v1296_v4 = vld [vmem:[%s1553_s5 + $0x70] sm:$0xff]  }
  0x50   :  { %760 = vmatpush2.bf16.msra.mxu0 %v1246_v5  ;;  %801 = vmatpush2.bf16.msra.mxu1 %v1249_v6  ;;  %v1297_v5 = vld [vmem:[%s1553_s5 + $0x30] sm:$0xff]   ;;  %v1298_v6 = vld [vmem:[%s1553_s5 + $0x68] sm:$0xff]  }
  0x51   :  { %761 = vmatprep.subr.bf16.mxu0 %v1254_v7  ;;  %802 = vmatprep.subr.bf16.mxu1 %v1257_v8  ;;  %v1299_v7 = vld [vmem:[%s1553_s5 + $0x28] sm:$0xff]   ;;  %v1300_v8 = vld [vmem:[%s1553_s5 + $0x60] sm:$0xff]  }
  0x54   :  { %762 = vmatpush2.bf16.msra.mxu0 %v1252_v9  ;;  %803 = vmatpush2.bf16.msra.mxu1 %v1255_v10  ;;  %v1301_v9 = vld [vmem:[%s1553_s5 + $0x20] sm:$0xff]   ;;  %v1302_v10 = vld [vmem:[%s1553_s5 + $0x58] sm:$0xff]  }
  0x55   :  { %763 = vmatprep.subr.bf16.mxu0 %v1260_v11  ;;  %804 = vmatprep.subr.bf16.mxu1 %v1263_v12  ;;  %v1303_v11 = vld [vmem:[%s1553_s5 + $0x18] sm:$0xff]   ;;  %v1304_v12 = vld [vmem:[%s1553_s5 + $0x50] sm:$0xff]  }
  0x58   :  { %764 = vmatpush2.bf16.msra.mxu0 %v1258_v13  ;;  %805 = vmatpush2.bf16.msra.mxu1 %v1261_v14  ;;  %v1305_v13 = vld [vmem:[%s1553_s5 + $0x10] sm:$0xff]   ;;  %v1306_v14 = vld [vmem:[%s1553_s5 + $0x48] sm:$0xff]  }
  0x59   :  { %765 = vmatprep.subr.bf16.mxu0 %v1266_v15  ;;  %806 = vmatprep.subr.bf16.mxu1 %v1269_v16  ;;  %v1307_v15 = vld [vmem:[%s1553_s5 + $0x8] sm:$0xff]   ;;  %v1308_v16 = vld [vmem:[%s1553_s5 + $0x40] sm:$0xff]  }
  0x5c   :  { %766 = vmatpush2.bf16.msra.mxu0 %v1264_v17  ;;  %807 = vmatpush2.bf16.msra.mxu1 %v1267_v18  ;;  %v1309_v17 = vld [vmem:[%s1553_s5] sm:$0xff]  }
  0x5d   :  { %767 = vmatprep.subr.bf16.mxu0 %v1272_v19  ;;  %808 = vmatprep.subr.bf16.mxu1 %v1275_v20  ;;  %v411_v18 = vld [vmem:[%s1552_s4] sm:$0x3] }
  0x5e   :  { %v416_v19 = vrot.slane %v411_v18, %v79_v38  ;;  %v420_v20 = vrot.slane %v411_v18, %v83_v41  ;;  %v1107_v38 = vld [vmem:[%s1554_s6] ss:$0 sm:$0xff] }
  0x60   :  { %768 = vmatpush2.bf16.msra.mxu0 %v1270_v21  ;;  %809 = vmatpush2.bf16.msra.mxu1 %v1273_v22 }
  0x61   :  { %769 = vmatprep.subr.bf16.mxu0 %v1278_v23  ;;  %810 = vmatprep.subr.bf16.mxu1 %v1281_v24 }
  0x64   :  { %770 = vmatpush2.bf16.msra.mxu0 %v1276_v25  ;;  %811 = vmatpush2.bf16.msra.mxu1 %v1279_v26 }
  0x65   :  { %771 = vmatprep.subr.bf16.mxu0 %v1284_v27  ;;  %812 = vmatprep.subr.bf16.mxu1 %v1287_v28 }
  0x68   :  { %772 = vmatpush2.bf16.msra.mxu0 %v1282_v29  ;;  %813 = vmatpush2.bf16.msra.mxu1 %v1285_v30 }
  0x69   :  { %773 = vmatprep.subr.bf16.mxu0 %v1290_v31  ;;  %814 = vmatprep.subr.bf16.mxu1 %v1293_v32 }
  0x6c   :  { %774 = vmatpush2.bf16.msra.mxu0 %v1288_v33  ;;  %815 = vmatpush2.bf16.msra.mxu1 %v1291_v34 }
  0x6d   :  { %1124 = vmatprep.subr.bf16.mxu0 %v1294_v35 }
  0xef   :  { %v291_v47 = vpop.f32.mrf.mxu0  ;;  %v332_v48 = vpop.f32.mrf.mxu1 }
  0xf0   :  { %v292_v49 = vadd.f32 %v291_v47, %v80_v43  ;;  %v333_v50 = vadd.f32 %v332_v48, %v88_v44 }
  0xf1   :  { %v293_v51 = vpop.f32.mrf.mxu0  ;;  %v334_v52 = vpop.f32.mrf.mxu1 }
  0xf2   :  { %v341_v53 = vmax.f32 %v333_v50, 0.0  ;;  %v294_v54 = vadd.f32 %v293_v51, %v84_v45  ;;  %v335_v55 = vadd.f32 %v334_v52, %v92_v46  ;;  %v339_v56 = vmax.f32 %v292_v49, 0.0 }
  0xf3   :  { %v295_v57 = vpop.f32.mrf.mxu0  ;;  %v336_v58 = vpop.f32.mrf.mxu1 }
  0xf4   :  { %v340_v59 = vmax.f32 %v294_v54, 0.0  ;;  %v342_v60 = vmax.f32 %v335_v55, 0.0  ;;  %v345_v61 = vpack.c.bf16 %v341_v53, %v341_v53  ;;  %v343_v3 = vpack.c.bf16 %v339_v56, %v339_v56 }
  0xf5   :  { %v296_v62 = vpop.f32.mrf.mxu0  ;;  %v337_v63 = vpop.f32.mrf.mxu1 }
  0xf6   :  { %v344_v0 = vpack.c.bf16 %v340_v59, %v340_v59  ;;  %v346_v1 = vpack.c.bf16 %v342_v60, %v342_v60 }
  0xf8   :  { %775 = vmatprep.mubr.bf16.mxu0 %v344_v0  ;;  %816 = vmatprep.mubr.bf16.mxu1 %v346_v1 }
  0xf9   :  { %776 = vmatmul.mubr.bf16.vlgmr.msra.gmra.mxu0 %v343_v3  ;;  %817 = vmatmul.mubr.bf16.vlgmr.msra.gmra.mxu1 %v345_v61 }
  0xfa   :  { %1125 = vmatpush3.bf16.msra.mxu0 %v1295_v2 }
  0xfb   :  { %1126 = vmatprep.subr.bf16.mxu0 %v1296_v4 }
  0xfe   :  { %1127 = vmatpush3.bf16.msra.mxu0 %v1297_v5 }
  0xff   :  { %1128 = vmatprep.subr.bf16.mxu0 %v1298_v6 }
 0x102   :  { %1129 = vmatpush3.bf16.msra.mxu0 %v1299_v7 }
 0x103   :  { %1130 = vmatprep.subr.bf16.mxu0 %v1300_v8 }
 0x106   :  { %1131 = vmatpush3.bf16.msra.mxu0 %v1301_v9 }
 0x107   :  { %1132 = vmatprep.subr.bf16.mxu0 %v1302_v10 }
 0x10a   :  { %1133 = vmatpush3.bf16.msra.mxu0 %v1303_v11 }
 0x10b   :  { %1134 = vmatprep.subr.bf16.mxu0 %v1304_v12 }
 0x10e   :  { %1135 = vmatpush3.bf16.msra.mxu0 %v1305_v13 }
 0x10f   :  { %1136 = vmatprep.subr.bf16.mxu0 %v1306_v14 }
 0x112   :  { %1137 = vmatpush3.bf16.msra.mxu0 %v1307_v15 }
 0x113   :  { %1138 = vmatprep.subr.bf16.mxu0 %v1308_v16 }
 0x116   :  { %1139 = vmatpush3.bf16.msra.mxu0 %v1309_v17 }
 0x1b9   :  { %v777_v21 = vpop.f32.mrf.mxu0  ;;  %v818_v22 = vpop.f32.mrf.mxu1 }
 0x1ba   :  { %v778_v23 = vadd.f32 %v777_v21, %v416_v19 }
 0x1bb   :  { %v779_v24 = vpop.f32.mrf.mxu0  ;;  %v820_v25 = vpop.f32.mrf.mxu1 }
 0x1bc   :  { %v819_v26 = vadd.f32 %v818_v22, %v778_v23  ;;  %v780_v27 = vadd.f32 %v779_v24, %v420_v20 }
 0x1bd   :  { %v781_v28 = vpop.f32.mrf.mxu0  ;;  %v822_v29 = vpop.f32.mrf.mxu1 }
 0x1be   :  { %v821_v30 = vadd.f32 %v820_v25, %v780_v27  ;;  %v825_v31 = vmax.f32 %v819_v26, 0.0 }
 0x1bf   :  { %v782_v32 = vpop.f32.mrf.mxu0  ;;  %v823_v33 = vpop.f32.mrf.mxu1 }
 0x1c0   :  { %v826_v34 = vmax.f32 %v821_v30, 0.0  ;;  %v827_v36 = vpack.c.bf16 %v825_v31, %v825_v31 }
 0x1c2   :  { %v828_v35 = vpack.c.bf16 %v826_v34, %v826_v34 }
 0x1c4   :  { %996 = vmatprep.mubr.bf16.mxu0 %v828_v35 }
 0x1c5   :  { %997 = vmatmul.mubr.bf16.vlgmr.msra.gmra.mxu0 %v827_v36 }
 0x285   :  { %v1140_v37 = vpop.f32.mrf.mxu0 }
 0x287   :  { %v1141_v39 = vpop.f32.mrf.mxu0 }
 0x288   :  { %v1142_v40 = vadd.f32 %v1141_v39, %v1140_v37 }
 0x289   :  { %v1143_v41 = vpop.f32.mrf.mxu0 }
 0x28a   :  { %v999_v42 = vadd.f32 %v1142_v40, %v1107_v38 }
 0x28b   :  { %v1144_v43 = vpop.f32.mrf.mxu0 }
 0x28c   :  { %1005 = vst.msk [vmem:[%s1555_s7] sm:$0xff] %vm1004_vm0, %v999_v42 }
 0x28d   :  { %1010 = vsyncpa [#allocation3], 1 }

</bundles_post_ra>
